<compile_context>
chip_gen: v6e
topology: v6e:2x2x1
jax: 0.10.0
libtpu: 0.0.40
codegen_flags: <defaults>
</compile_context>

<pallas_src>
import jax
import jax.numpy as jnp
from jax.experimental import pallas as pl
from jax.experimental.pallas import tpu as pltpu


def _round_up(n, m):
    return ((n + m - 1) // m) * m


def _mlp_kernel(x_ref, w1_ref, b1_ref, w2_ref, b2_ref, w3_ref, b3_ref, o_ref):
    # Cast the activation tile to the weight dtype (bf16 on the fast path;
    # a no-op on the f32 path).  Weights arrive pre-cast from the wrapper.
    x = x_ref[...].astype(w1_ref.dtype)

    # fc1 + ReLU (f32 accumulation on the MXU).
    h1 = jnp.dot(x, w1_ref[...], preferred_element_type=jnp.float32)
    h1 = jnp.maximum(h1 + b1_ref[...], 0.0).astype(w2_ref.dtype)

    # fc2 + ReLU.
    h2 = jnp.dot(h1, w2_ref[...], preferred_element_type=jnp.float32)
    h2 = jnp.maximum(h2 + b2_ref[...], 0.0).astype(w3_ref.dtype)

    # fc3 (no activation).  NOTE: N=2 / K=64 costs the same vmatmul pushes as
    # fc1/fc2; if a bundle dump shows the MXU-push slot binding, move this layer
    # to VPU multiplies + an XLU cross-lane sum instead (measure first).
    out = jnp.dot(h2, w3_ref[...], preferred_element_type=jnp.float32) + b3_ref[...]
    o_ref[...] = out.astype(o_ref.dtype)


def metaphor_nn_forward(x, params, *, tile_b=4096, use_bf16=True):
    """x: [B, input_size] float32. params: dict of w1,b1,w2,b2,w3,b3 (f32)."""
    w1, b1 = params["w1"], params["b1"]
    w2, b2 = params["w2"], params["b2"]
    w3, b3 = params["w3"], params["b3"]
    if use_bf16:
        # Cast once host-side; the weight blocks stay resident in VMEM across the
        # whole grid, so an in-kernel cast would redo this work every grid step.
        w1, w2, w3 = (w.astype(jnp.bfloat16) for w in (w1, w2, w3))

    B, D = x.shape
    H1, H2, out_dim = w1.shape[1], w2.shape[1], w3.shape[1]

    # Batch tile: multiple of 8 (sublane rule), capped at ceil(B/2) so mid-size
    # batches still give >= 2 grid steps for 2-TC (v7x) megacore sharding.
    tb = min(_round_up(tile_b, 8), _round_up(pl.cdiv(B, 2), 8))
    grid = (pl.cdiv(B, tb),)

    # Constant index_map -> weights/biases are DMA'd once and kept resident.
    const2 = lambda i: (0, 0)
    in_specs = [
        pl.BlockSpec((tb, D), lambda i: (i, 0)),  # x: tiled over batch
        pl.BlockSpec(w1.shape, const2),
        pl.BlockSpec(b1.shape, const2),
        pl.BlockSpec(w2.shape, const2),
        pl.BlockSpec(b2.shape, const2),
        pl.BlockSpec(w3.shape, const2),
        pl.BlockSpec(b3.shape, const2),
    ]
    # Output kept 2-wide: lane-dense padding would cost ~4.7x HBM writeback;
    # only worth it if xprof shows the store path exposed (measure first).
    out_spec = pl.BlockSpec((tb, out_dim), lambda i: (i, 0))

    wbytes = sum(int(a.size) * a.dtype.itemsize for a in (w1, b1, w2, b2, w3, b3))
    cost = pl.CostEstimate(
        flops=2 * B * (D * H1 + H1 * H2 + H2 * out_dim),
        transcendentals=0,
        bytes_accessed=int(x.size) * x.dtype.itemsize + 4 * B * out_dim + wbytes,
    )

    return pl.pallas_call(
        _mlp_kernel,
        out_shape=jax.ShapeDtypeStruct((B, out_dim), jnp.float32),
        grid=grid,
        in_specs=in_specs,
        out_specs=out_spec,
        cost_estimate=cost,
        compiler_params=pltpu.CompilerParams(
            dimension_semantics=("parallel",),
            vmem_limit_bytes=48 * 1024 * 1024,
        ),
    )(x, w1, b1, w2, b2, w3, b3)


def init_params(key, input_size):
    """Deterministic init mimicking nn.Linear's U(-1/sqrt(fan_in), 1/sqrt(fan_in))."""
    dims = [(input_size, 128), (128, 64), (64, 2)]
    params = {}
    for i, (fan_in, fan_out) in enumerate(dims, start=1):
        key, kw, kb = jax.random.split(key, 3)
        bound = 1.0 / jnp.sqrt(jnp.float32(fan_in))
        params[f"w{i}"] = jax.random.uniform(
            kw, (fan_in, fan_out), jnp.float32, minval=-bound, maxval=bound
        )
        params[f"b{i}"] = jax.random.uniform(
            kb, (1, fan_out), jnp.float32, minval=-bound, maxval=bound
        )
    return params


def reference_forward(x, p):
    hp = jax.lax.Precision.HIGHEST  # avoid TPU default bf16 downgrade in the reference
    h1 = jnp.maximum(jnp.dot(x, p["w1"], precision=hp) + p["b1"], 0.0)
    h2 = jnp.maximum(jnp.dot(h1, p["w2"], precision=hp) + p["b2"], 0.0)
    return jnp.dot(h2, p["w3"], precision=hp) + p["b3"]


if __name__ == "__main__":
    key = jax.random.PRNGKey(0)
    k_x, k_p = jax.random.split(key)

    batch, input_size = 8, 32
    x = jax.random.normal(k_x, (batch, input_size), jnp.float32)
    params = init_params(k_p, input_size)
    ref = reference_forward(x, params)

    # Exact f32 path (single grid step), tight tolerance.
    out_f32 = jax.block_until_ready(metaphor_nn_forward(x, params, use_bf16=False))
    assert out_f32.shape == (batch, 2)
    assert jnp.allclose(out_f32, ref, atol=1e-4, rtol=1e-4)

    # Default bf16-MXU path (f32 accumulation), bf16-appropriate tolerance.
    out_bf16 = jax.block_until_ready(metaphor_nn_forward(x, params))
    assert out_bf16.shape == (batch, 2)
    assert jnp.allclose(out_bf16, ref, atol=2e-2, rtol=2e-2)

    # Multi-tile + ragged-edge run: 100 rows with 32-row tiles -> grid=(4,),
    # last block is masked by Pallas (no host-side pad/slice anymore).
    batch2 = 100
    x2 = jax.random.normal(k_x, (batch2, input_size), jnp.float32)
    out2 = jax.block_until_ready(metaphor_nn_forward(x2, params, tile_b=32))
    ref2 = reference_forward(x2, params)
    assert out2.shape == (batch2, 2)
    assert jnp.allclose(out2, ref2, atol=2e-2, rtol=2e-2)

    print("KERNEL_OK")
</pallas_src>

<mosaic_0001>
module attributes {stable_mosaic.version = 11 : i64} {
  func.func @_mlp_kernel(%arg0: i32, %arg1: memref<8x32xf32, #tpu.memory_space<vmem>>, %arg2: memref<32x128xf32, #tpu.memory_space<vmem>>, %arg3: memref<1x128xf32, #tpu.memory_space<vmem>>, %arg4: memref<128x64xf32, #tpu.memory_space<vmem>>, %arg5: memref<1x64xf32, #tpu.memory_space<vmem>>, %arg6: memref<64x2xf32, #tpu.memory_space<vmem>>, %arg7: memref<1x2xf32, #tpu.memory_space<vmem>>, %arg8: memref<8x2xf32, #tpu.memory_space<vmem>>) attributes {dimension_semantics = [#tpu.dimension_semantics<parallel>], iteration_bounds = array<i64: 1>, scalar_prefetch = 0 : i64, scratch_operands = 0 : i64, tpu.core_type = #tpu.core_type<tc>, window_params = [{transform_indices = @transform_0, window_bounds = array<i64: 8, 32>}, {pipeline_mode = #tpu.pipeline_mode<synchronous>, transform_indices = @transform_1, window_bounds = array<i64: 32, 128>}, {pipeline_mode = #tpu.pipeline_mode<synchronous>, transform_indices = @transform_2, window_bounds = array<i64: 1, 128>}, {pipeline_mode = #tpu.pipeline_mode<synchronous>, transform_indices = @transform_3, window_bounds = array<i64: 128, 64>}, {pipeline_mode = #tpu.pipeline_mode<synchronous>, transform_indices = @transform_4, window_bounds = array<i64: 1, 64>}, {pipeline_mode = #tpu.pipeline_mode<synchronous>, transform_indices = @transform_5, window_bounds = array<i64: 64, 2>}, {pipeline_mode = #tpu.pipeline_mode<synchronous>, transform_indices = @transform_6, window_bounds = array<i64: 1, 2>}, {transform_indices = @transform_7, window_bounds = array<i64: 8, 2>}]} {
    %c0 = arith.constant 0 : index
    %c0_0 = arith.constant 0 : index
    %0 = vector.load %arg1[%c0, %c0_0] : memref<8x32xf32, #tpu.memory_space<vmem>>, vector<8x32xf32>
    %c0_1 = arith.constant 0 : index
    %c0_2 = arith.constant 0 : index
    %1 = vector.load %arg2[%c0_1, %c0_2] : memref<32x128xf32, #tpu.memory_space<vmem>>, vector<32x128xf32>
    %cst = arith.constant dense<0.000000e+00> : vector<8x128xf32>
    %2 = tpu.matmul %0, %1, %cst {dimension_numbers = #tpu.dot_dimension_numbers<[1], [0], [0], [1], [0, 0, 1, 1], [], []>} : vector<8x32xf32>, vector<32x128xf32>, vector<8x128xf32> -> vector<8x128xf32>
    %c0_3 = arith.constant 0 : index
    %c0_4 = arith.constant 0 : index
    %3 = vector.load %arg3[%c0_3, %c0_4] : memref<1x128xf32, #tpu.memory_space<vmem>>, vector<1x128xf32>
    %4 = vector.broadcast %3 : vector<1x128xf32> to vector<8x128xf32>
    %5 = arith.addf %2, %4 : vector<8x128xf32>
    %cst_5 = arith.constant 0.000000e+00 : f32
    %6 = vector.broadcast %cst_5 : f32 to vector<8x128xf32>
    %7 = arith.maximumf %5, %6 : vector<8x128xf32>
    %c0_6 = arith.constant 0 : index
    %c0_7 = arith.constant 0 : index
    %8 = vector.load %arg4[%c0_6, %c0_7] : memref<128x64xf32, #tpu.memory_space<vmem>>, vector<128x64xf32>
    %cst_8 = arith.constant dense<0.000000e+00> : vector<8x64xf32>
    %9 = tpu.matmul %7, %8, %cst_8 {dimension_numbers = #tpu.dot_dimension_numbers<[1], [0], [0], [1], [0, 0, 1, 1], [], []>} : vector<8x128xf32>, vector<128x64xf32>, vector<8x64xf32> -> vector<8x64xf32>
    %c0_9 = arith.constant 0 : index
    %c0_10 = arith.constant 0 : index
    %10 = vector.load %arg5[%c0_9, %c0_10] : memref<1x64xf32, #tpu.memory_space<vmem>>, vector<1x64xf32>
    %11 = vector.broadcast %10 : vector<1x64xf32> to vector<8x64xf32>
    %12 = arith.addf %9, %11 : vector<8x64xf32>
    %cst_11 = arith.constant 0.000000e+00 : f32
    %13 = vector.broadcast %cst_11 : f32 to vector<8x64xf32>
    %14 = arith.maximumf %12, %13 : vector<8x64xf32>
    %c0_12 = arith.constant 0 : index
    %c0_13 = arith.constant 0 : index
    %15 = vector.load %arg6[%c0_12, %c0_13] : memref<64x2xf32, #tpu.memory_space<vmem>>, vector<64x2xf32>
    %cst_14 = arith.constant dense<0.000000e+00> : vector<8x2xf32>
    %16 = tpu.matmul %14, %15, %cst_14 {dimension_numbers = #tpu.dot_dimension_numbers<[1], [0], [0], [1], [0, 0, 1, 1], [], []>} : vector<8x64xf32>, vector<64x2xf32>, vector<8x2xf32> -> vector<8x2xf32>
    %c0_15 = arith.constant 0 : index
    %c0_16 = arith.constant 0 : index
    %17 = vector.load %arg7[%c0_15, %c0_16] : memref<1x2xf32, #tpu.memory_space<vmem>>, vector<1x2xf32>
    %18 = vector.broadcast %17 : vector<1x2xf32> to vector<8x2xf32>
    %19 = arith.addf %16, %18 : vector<8x2xf32>
    %c0_17 = arith.constant 0 : index
    %c0_18 = arith.constant 0 : index
    %20 = vector.load %arg8[%c0_17, %c0_18] : memref<8x2xf32, #tpu.memory_space<vmem>>, vector<8x2xf32>
    tpu.vector_store %arg8[%c0_17, %c0_18], %19 {strides = array<i32>} : memref<8x2xf32, #tpu.memory_space<vmem>>, vector<8x2xf32>,
    return
  }
  func.func @transform_0(%arg0: i32) -> (i32, i32) {
    %c0_i32 = arith.constant 0 : i32
    %c0_i32_0 = arith.constant 0 : i32
    return %arg0, %c0_i32 : i32, i32
  }
  func.func @transform_1(%arg0: i32) -> (i32, i32) {
    %c0_i32 = arith.constant 0 : i32
    %c0_i32_0 = arith.constant 0 : i32
    %c0_i32_1 = arith.constant 0 : i32
    return %c0_i32, %c0_i32_0 : i32, i32
  }
  func.func @transform_2(%arg0: i32) -> (i32, i32) {
    %c0_i32 = arith.constant 0 : i32
    %c0_i32_0 = arith.constant 0 : i32
    %c0_i32_1 = arith.constant 0 : i32
    return %c0_i32, %c0_i32_0 : i32, i32
  }
  func.func @transform_3(%arg0: i32) -> (i32, i32) {
    %c0_i32 = arith.constant 0 : i32
    %c0_i32_0 = arith.constant 0 : i32
    %c0_i32_1 = arith.constant 0 : i32
    return %c0_i32, %c0_i32_0 : i32, i32
  }
  func.func @transform_4(%arg0: i32) -> (i32, i32) {
    %c0_i32 = arith.constant 0 : i32
    %c0_i32_0 = arith.constant 0 : i32
    %c0_i32_1 = arith.constant 0 : i32
    return %c0_i32, %c0_i32_0 : i32, i32
  }
  func.func @transform_5(%arg0: i32) -> (i32, i32) {
    %c0_i32 = arith.constant 0 : i32
    %c0_i32_0 = arith.constant 0 : i32
    %c0_i32_1 = arith.constant 0 : i32
    return %c0_i32, %c0_i32_0 : i32, i32
  }
  func.func @transform_6(%arg0: i32) -> (i32, i32) {
    %c0_i32 = arith.constant 0 : i32
    %c0_i32_0 = arith.constant 0 : i32
    %c0_i32_1 = arith.constant 0 : i32
    return %c0_i32, %c0_i32_0 : i32, i32
  }
  func.func @transform_7(%arg0: i32) -> (i32, i32) {
    %c0_i32 = arith.constant 0 : i32
    %c0_i32_0 = arith.constant 0 : i32
    return %arg0, %c0_i32 : i32, i32
  }
}

</mosaic_0001>

<bundles_post_ra>
// kernel: tpu_custom_call.1
= control target key start
LH: loop header
LB: loop body
LE: loop exit
PB: predicated region body
PF: predicated region fallthrough
CT: control target
= control target key end

     0   :  { %v405_v0 = vmov 0.0   ;;  %vm406_vm0 = vmmov 0   ;;  %vm38_vm1 = vcmask 261120   ;;  %vm222_vm2 = vcmask 523264   ;;  %s580_s1 = inlined_call_operand.vmem [shape: f32[32,128], index: 1, kind: input, shape index: {}]   ;;  %s581_s3 = inlined_call_operand.vmem [shape: f32[128,64], index: 3, kind: input, shape index: {}]   ;;  %s582_s0 = inlined_call_operand.vmem [shape: f32[8,32], index: 0, kind: input, shape index: {}]   ;;  %s583_s5 = inlined_call_operand.vmem [shape: f32[64,2], index: 5, kind: input, shape index: {}]   ;;  %s584_s2 = inlined_call_operand.vmem [shape: f32[1,128], index: 2, kind: input, shape index: {}]   ;;  %s585_s4 = inlined_call_operand.vmem [shape: f32[1,64], index: 4, kind: input, shape index: {}]   ;;  %s586_s6 = inlined_call_operand.vmem [shape: f32[1,2], index: 6, kind: input, shape index: {}]   ;;  %s587_s7 = inlined_call_operand.vmem [shape: f32[8,2], index: 7, kind: output, shape index: {}]  }
   0x1   :  { %338 = vmatprep.subr.mxu0 %v405_v0  ;;  %v30_v1 = vld [vmem:[%s580_s1 + $0x18] sm:$0xff]  ;;  %v29_v2 = vld [vmem:[%s580_s1 + $0x10] sm:$0xff]  ;;  %346 = vmatprep.mubr.msk.f32.mxu0 %vm406_vm0, %v405_v0  ;;  %v28_v4 = vld [vmem:[%s580_s1 + $0x8] sm:$0xff]  ;;  %vm296_vm3 = vcmask 15360  }
   0x2   :  { %339 = vmatpush3.msra.mxu0 %v30_v1  ;;  %349 = vmatprep.subr.mxu1 %v405_v0  ;;  %v128_v3 = vld [vmem:[%s581_s3 + $0x78] sm:$0xff]  ;;  %v127_v5 = vld [vmem:[%s581_s3 + $0x70] sm:$0xff]  ;;  %v126_v6 = vld [vmem:[%s581_s3 + $0x68] sm:$0xff] }
   0x3   :  { %340 = vmatprep.subr.mxu0 %v405_v0  ;;  %350 = vmatpush3.msra.mxu1 %v128_v3  ;;  %v27_v7 = vld [vmem:[%s580_s1] sm:$0xff]  ;;  %v124_v10 = vld [vmem:[%s581_s3 + $0x58] sm:$0xff]  ;;  %v123_v11 = vld [vmem:[%s581_s3 + $0x50] sm:$0xff] }
   0x4   :  { %341 = vmatpush3.msra.mxu0 %v29_v2  ;;  %351 = vmatprep.subr.mxu1 %v405_v0  ;;  %v26_v8 = vld [vmem:[%s582_s0] sm:$0xff]  ;;  %v122_v12 = vld [vmem:[%s581_s3 + $0x48] sm:$0xff]  ;;  %v120_v14 = vld [vmem:[%s581_s3 + $0x38] sm:$0xff] }
   0x5   :  { %342 = vmatprep.subr.mxu0 %v405_v0  ;;  %352 = vmatpush3.msra.mxu1 %v127_v5  ;;  %v125_v9 = vld [vmem:[%s581_s3 + $0x60] sm:$0xff]  ;;  %v119_v15 = vld [vmem:[%s581_s3 + $0x30] sm:$0xff]  ;;  %v118_v16 = vld [vmem:[%s581_s3 + $0x28] sm:$0xff] }
   0x6   :  { %343 = vmatpush3.msra.mxu0 %v28_v4  ;;  %353 = vmatprep.subr.mxu1 %v405_v0  ;;  %v121_v13 = vld [vmem:[%s581_s3 + $0x40] sm:$0xff]  ;;  %v116_v18 = vld [vmem:[%s581_s3 + $0x18] sm:$0xff]  ;;  %v115_v19 = vld [vmem:[%s581_s3 + $0x10] sm:$0xff] }
   0x7   :  { %344 = vmatprep.subr.mxu0 %v405_v0  ;;  %354 = vmatpush3.msra.mxu1 %v126_v6  ;;  %v117_v17 = vld [vmem:[%s581_s3 + $0x20] sm:$0xff]  ;;  %v114_v20 = vld [vmem:[%s581_s3 + $0x8] sm:$0xff]  ;;  %v214_v22 = vld [vmem:[%s583_s5 + $0x38] sm:$0xff] }
   0x8   :  { %345 = vmatpush3.msra.mxu0 %v27_v7  ;;  %355 = vmatprep.subr.mxu1 %v405_v0  ;;  %v113_v21 = vld [vmem:[%s581_s3] sm:$0xff]  ;;  %v213_v23 = vld [vmem:[%s583_s5 + $0x30] sm:$0xff]  ;;  %v212_v24 = vld [vmem:[%s583_s5 + $0x28] sm:$0xff] }
   0x9   :  { %347 = vmatmul.mubr.msk.f32.vlgmr.msra.gmra.mxu0 %vm38_vm1, %v26_v8  ;;  %356 = vmatpush3.msra.mxu1 %v125_v9  ;;  %v211_v25 = vld [vmem:[%s583_s5 + $0x20] sm:$0xff]  ;;  %v210_v26 = vld [vmem:[%s583_s5 + $0x18] sm:$0xff]  ;;  %v209_v32 = vld [vmem:[%s583_s5 + $0x10] sm:$0xff] }
   0xa   :  { %357 = vmatprep.subr.mxu1 %v405_v0  ;;  %381 = vmatprep.mubr.msk.f32.mxu1 %vm406_vm0, %v405_v0  ;;  %v302_v27 = vld [vmem:[%s584_s2] ss:$0 sm:$0xff]  ;;  %v208_v33 = vld [vmem:[%s583_s5 + $0x8] sm:$0xff] }
   0xb   :  { %358 = vmatpush3.msra.mxu1 %v124_v10  ;;  %384 = vmatprep.subr.mxu0 %v405_v0  ;;  %v207_v34 = vld [vmem:[%s583_s5] sm:$0xff] }
   0xc   :  { %359 = vmatprep.subr.mxu1 %v405_v0  ;;  %400 = vmatprep.mubr.msk.f32.mxu0 %vm406_vm0, %v405_v0  ;;  %v304_v35 = vld [vmem:[%s585_s4] ss:$0 sm:$0xff] }
   0xd   :  { %360 = vmatpush3.msra.mxu1 %v123_v11  ;;  %385 = vmatpush3.msra.mxu0 %v214_v22  ;;  %v305_v40 = vld [vmem:[%s586_s6] ss:$0 sm:$0xff] }
   0xe   :  { %361 = vmatprep.subr.mxu1 %v405_v0  ;;  %386 = vmatprep.subr.mxu0 %v405_v0 }
   0xf   :  { %362 = vmatpush3.msra.mxu1 %v122_v12  ;;  %387 = vmatpush3.msra.mxu0 %v213_v23 }
  0x10   :  { %363 = vmatprep.subr.mxu1 %v405_v0  ;;  %388 = vmatprep.subr.mxu0 %v405_v0 }
  0x11   :  { %364 = vmatpush3.msra.mxu1 %v121_v13  ;;  %389 = vmatpush3.msra.mxu0 %v212_v24 }
  0x12   :  { %365 = vmatprep.subr.mxu1 %v405_v0  ;;  %390 = vmatprep.subr.mxu0 %v405_v0 }
  0x13   :  { %366 = vmatpush3.msra.mxu1 %v120_v14  ;;  %391 = vmatpush3.msra.mxu0 %v211_v25 }
  0x14   :  { %367 = vmatprep.subr.mxu1 %v405_v0  ;;  %392 = vmatprep.subr.mxu0 %v405_v0 }
  0x15   :  { %368 = vmatpush3.msra.mxu1 %v119_v15  ;;  %393 = vmatpush3.msra.mxu0 %v210_v26 }
  0x16   :  { %369 = vmatprep.subr.mxu1 %v405_v0  ;;  %394 = vmatprep.subr.mxu0 %v405_v0 }
  0x17   :  { %370 = vmatpush3.msra.mxu1 %v118_v16  ;;  %395 = vmatpush3.msra.mxu0 %v209_v32 }
  0x18   :  { %371 = vmatprep.subr.mxu1 %v405_v0  ;;  %396 = vmatprep.subr.mxu0 %v405_v0 }
  0x19   :  { %372 = vmatpush3.msra.mxu1 %v117_v17  ;;  %397 = vmatpush3.msra.mxu0 %v208_v33 }
  0x1a   :  { %373 = vmatprep.subr.mxu1 %v405_v0  ;;  %398 = vmatprep.subr.mxu0 %v405_v0 }
  0x1b   :  { %374 = vmatpush3.msra.mxu1 %v116_v18  ;;  %399 = vmatpush3.msra.mxu0 %v207_v34 }
  0x1c   :  { %375 = vmatprep.subr.mxu1 %v405_v0 }
  0x1d   :  { %376 = vmatpush3.msra.mxu1 %v115_v19 }
  0x1e   :  { %377 = vmatprep.subr.mxu1 %v405_v0 }
  0x1f   :  { %378 = vmatpush3.msra.mxu1 %v114_v20 }
  0x20   :  { %379 = vmatprep.subr.mxu1 %v405_v0 }
  0x21   :  { %380 = vmatpush3.msra.mxu1 %v113_v21 }
  0xc9   :  { %v108_v28 = vpop.f32.mrf.mxu0 }
  0xca   :  { %v109_v29 = vadd.f32 %v302_v27, %v108_v28 }
  0xcb   :  { %v348_v30 = vpop.f32.mrf.mxu0 }
  0xcc   :  { %v112_v31 = vmax.f32 %v109_v29, 0.0 }
  0xce   :  { %382 = vmatmul.mubr.f32.vlgmr.msra.gmra.mxu1 %v112_v31 }
 0x18e   :  { %v202_v36 = vpop.f32.mrf.mxu1 }
 0x18f   :  { %v203_v37 = vadd.f32 %v304_v35, %v202_v36 }
 0x190   :  { %v383_v38 = vpop.f32.mrf.mxu1 }
 0x191   :  { %v206_v39 = vmax.f32 %v203_v37, 0.0 }
 0x193   :  { %401 = vmatmul.mubr.msk.f32.vlgmr.msra.gmra.mxu0 %vm222_vm2, %v206_v39 }
 0x253   :  { %v292_v41 = vpop.f32.mrf.mxu0 }
 0x254   :  { %v293_v42 = vadd.f32 %v305_v40, %v292_v41 }
 0x255   :  { %v402_v43 = vpop.f32.mrf.mxu0 }
 0x256   :  { %297 = vst.msk [vmem:[%s587_s7] sm:$0xff] %vm296_vm3, %v293_v42 }

</bundles_post_ra>
